<compile_context>
chip_gen: v6e
topology: v6e:2x2x1
jax: 0.10.0
libtpu: 0.0.40
codegen_flags: <defaults>
</compile_context>

<pallas_src>
import numpy as np
import jax
import jax.numpy as jnp
from jax.experimental import pallas as pl
from jax.experimental.pallas import tpu as pltpu

F32_EPS = np.float32(np.finfo(np.float32).eps)  # == torch.finfo(torch.float32).eps


def _round_up(x: int, m: int) -> int:
    return (x + m - 1) // m * m


# ---------------------------------------------------------------------------
# Stage 1: ReLU MLP over conv_list  (h = relu(... relu(x @ W0 + b0) ... ))
# ---------------------------------------------------------------------------
def _make_mlp_kernel(num_layers: int):
    def kernel(*refs):
        x_ref = refs[0]
        wb_refs = refs[1:1 + 2 * num_layers]
        h_ref = refs[1 + 2 * num_layers]

        h = x_ref[...]                                   # [row_tile, F] f32
        for i in range(num_layers):
            w = wb_refs[2 * i][...]                      # [in, out]
            b = wb_refs[2 * i + 1][...]                  # [1, out]
            h = jnp.dot(h, w, preferred_element_type=jnp.float32) + b
            h = jnp.maximum(h, 0.0)                      # ReLU
        h_ref[...] = h

    return kernel


def _mlp_forward(x_pad, weights, biases, *, row_tile):
    n_pad, f_in = x_pad.shape
    num_layers = len(weights)
    d_out = weights[-1].shape[1]

    args = [x_pad]
    in_specs = [pl.BlockSpec((row_tile, f_in), lambda i: (i, 0))]
    for w, b in zip(weights, biases):
        w = w.astype(jnp.float32)
        b = b.reshape(1, -1).astype(jnp.float32)
        args += [w, b]
        in_specs += [
            pl.BlockSpec(w.shape, lambda i: (0, 0)),     # full weight, resident
            pl.BlockSpec(b.shape, lambda i: (0, 0)),     # full bias, resident
        ]

    return pl.pallas_call(
        _make_mlp_kernel(num_layers),
        out_shape=jax.ShapeDtypeStruct((n_pad, d_out), jnp.float32),
        grid=(n_pad // row_tile,),
        in_specs=in_specs,
        out_specs=pl.BlockSpec((row_tile, d_out), lambda i: (i, 0)),
        compiler_params=pltpu.CompilerParams(
            dimension_semantics=("parallel",)),
    )(*args)


# ---------------------------------------------------------------------------
# Stage 2: tiled adjacency (Gram-matrix pairwise distances + sigmoid epilogue)
# ---------------------------------------------------------------------------
def _sigmoid_fast(p):
    # Single EUP transcendental instead of exp + reciprocal.
    return 0.5 * jnp.tanh(0.5 * p) + 0.5


def _adj_kernel(hi_ref, hjT_ref, ni_ref, nj_ref, temp_ref, theta_ref, adj_ref):
    temp = temp_ref[0, 0]
    theta = theta_ref[0, 0]

    # Gram on the MXU: lane-dense (tile, D) @ (D, tile) standard contraction.
    gram = jnp.dot(hi_ref[...], hjT_ref[...],
                   preferred_element_type=jnp.float32)           # [tm, tn]

    # clamp: Gram-based sq can be slightly negative from rounding.
    sq = jnp.maximum(ni_ref[...] + nj_ref[...] - 2.0 * gram, 0.0)
    prob = temp * (-jnp.sqrt(sq + F32_EPS)) + theta

    on_diag = pl.program_id(0) == pl.program_id(1)

    @pl.when(jnp.logical_not(on_diag))
    def _():  # off-diagonal tiles: no iota/select filler
        adj_ref[...] = _sigmoid_fast(prob).astype(adj_ref.dtype)

    @pl.when(on_diag)
    def _():  # diagonal tiles: dist=0 on the diagonal and torch's +eye(N) term
        tm, tn = adj_ref.shape
        row = jax.lax.broadcasted_iota(jnp.int32, (tm, tn), 0)
        col = jax.lax.broadcasted_iota(jnp.int32, (tm, tn), 1)
        p = jnp.where(row == col, theta + 1.0, prob)
        adj_ref[...] = _sigmoid_fast(p).astype(adj_ref.dtype)


def _adj_forward(h_pad, hT_pad, ni_col, nj_row, temp, theta, *, n, tile,
                 out_dtype=jnp.float32):
    n_pad, d = h_pad.shape
    grid_dim = n_pad // tile
    temp_arr = jnp.asarray(temp, jnp.float32).reshape(1, 1)
    theta_arr = jnp.asarray(theta, jnp.float32).reshape(1, 1)

    out_bytes = n * n * np.dtype(out_dtype).itemsize
    cost = pl.CostEstimate(
        flops=2 * n_pad * n_pad * d + 8 * n_pad * n_pad,
        transcendentals=2 * n_pad * n_pad,               # sqrt + tanh
        bytes_accessed=int(out_bytes + 4 * grid_dim * (2 * n_pad * d + 2 * n_pad)),
    )

    return pl.pallas_call(
        _adj_kernel,
        out_shape=jax.ShapeDtypeStruct((n, n), out_dtype),        # exact (N, N)
        grid=(grid_dim, grid_dim),
        in_specs=[
            pl.BlockSpec((tile, d), lambda i, j: (i, 0)),         # h rows, i
            pl.BlockSpec((d, tile), lambda i, j: (0, j)),         # h^T cols, j
            pl.BlockSpec((tile, 1), lambda i, j: (i, 0)),         # ||h_i||^2
            pl.BlockSpec((1, tile), lambda i, j: (0, j)),         # ||h_j||^2
            pl.BlockSpec(memory_space=pltpu.MemorySpace.SMEM),    # temp scalar
            pl.BlockSpec(memory_space=pltpu.MemorySpace.SMEM),    # theta scalar
        ],
        out_specs=pl.BlockSpec((tile, tile), lambda i, j: (i, j)),
        compiler_params=pltpu.CompilerParams(
            dimension_semantics=("parallel", "parallel")),
        cost_estimate=cost,
    )(h_pad, hT_pad, ni_col, nj_row, temp_arr, theta_arr)


# ---------------------------------------------------------------------------
# Top-level LGL forward
# ---------------------------------------------------------------------------
_EDGE_INDEX_CACHE = {}


def _edge_index(n: int):
    """dense_to_sparse indices: pure function of N, cached across calls."""
    ei = _EDGE_INDEX_CACHE.get(n)
    if ei is None:
        rows = jax.lax.broadcasted_iota(jnp.int32, (n, n), 0).reshape(-1)
        cols = jax.lax.broadcasted_iota(jnp.int32, (n, n), 1).reshape(-1)
        ei = jnp.stack([rows, cols], axis=0)             # [2, N*N] row-major
        _EDGE_INDEX_CACHE[n] = jax.block_until_ready(ei)
    return _EDGE_INDEX_CACHE[n]


def lgl_forward(x, weights, biases, temp, theta, *, tile=512,
                out_dtype=jnp.float32):
    """weights[i]: [in_i, out_i] (already transposed vs torch); biases[i]: [out_i].

    out_dtype=jnp.bfloat16 halves adjacency writeback bytes (v6e/v7x only;
    will not meet the 1e-3 f32 tolerance, so it is opt-in).
    """
    n = x.shape[0]
    assert tile % 128 == 0 and tile >= 128
    tile_eff = max(128, min(tile, _round_up(n, 128)))
    grid_dim = (n + tile_eff - 1) // tile_eff
    n_pad = grid_dim * tile_eff          # h padded so all input reads are in-bounds

    x_pad = jnp.pad(x.astype(jnp.float32), ((0, n_pad - n), (0, 0)))
    h_pad = _mlp_forward(x_pad, weights, biases, row_tile=tile_eff)   # [n_pad, D]

    # Tiny O(N*D) side-arrays (negligible vs the O(N^2) adjacency traffic):
    hT_pad = h_pad.T                                     # [D, n_pad] lane-dense RHS
    sqn = jnp.sum(h_pad * h_pad, axis=1)                 # [n_pad]
    ni_col = sqn.reshape(n_pad, 1)
    nj_row = sqn.reshape(1, n_pad)

    adj = _adj_forward(h_pad, hT_pad, ni_col, nj_row, temp, theta,
                       n=n, tile=tile_eff, out_dtype=out_dtype)       # [N, N]

    # dense_to_sparse: sigmoid output is strictly > 0, so every (i, j) pair is
    # an edge, enumerated row-major (matches torch_geometric).
    edge_index = _edge_index(n)                          # [2, N*N], cached
    edge_weight = adj.reshape(-1)                        # [N*N]
    return x, edge_index, edge_weight, adj


def lgl_reference(x, weights, biases, temp, theta):
    """Pure-JAX reference mirroring the PyTorch forward exactly."""
    h = x
    for w, b in zip(weights, biases):
        h = jnp.maximum(h @ w + b, 0.0)
    diff = h[:, None, :] - h[None, :, :]
    sq = jnp.sum(diff ** 2, axis=2)
    mask = sq != 0.0
    dist = -jnp.sqrt(sq + F32_EPS)
    dist = jnp.where(mask, dist, 0.0)
    prob = temp * dist + theta
    adj = jax.nn.sigmoid(prob + jnp.eye(x.shape[0], dtype=jnp.float32))
    return adj


if __name__ == "__main__":
    # config for the synthetic module (population_level_module == 'LGL', so no mu/sigma)
    config = {
        "population_layers": [32, 16],
        "temp": 1.0,
        "theta": 0.5,
        "population_level_module": "LGL",
    }
    INPUT_SIZE = 16
    dims = [INPUT_SIZE] + list(config["population_layers"])

    key = jax.random.PRNGKey(0)
    # Deterministic Linear parameters (PyTorch-style uniform(-1/sqrt(fan_in), ...)),
    # stored pre-transposed as [in, out].
    weights, biases = [], []
    for i in range(len(dims) - 1):
        fan_in, fan_out = dims[i], dims[i + 1]
        bound = 1.0 / np.sqrt(fan_in)
        kw, kb, key = jax.random.split(key, 3)
        weights.append(jax.random.uniform(kw, (fan_in, fan_out), jnp.float32, -bound, bound))
        biases.append(jax.random.uniform(kb, (fan_out,), jnp.float32, -bound, bound))
    # TODO(synk): self.weight_layer exists in __init__ but is unused in forward(); omitted.

    # Two sizes: tiny (N < 128, single 128-tile) and ragged multi-of-128 (N=300 -> 384 tile).
    for n in (8, 300):
        kx, key = jax.random.split(key)
        x = jax.random.normal(kx, (n, INPUT_SIZE), dtype=jnp.float32)

        x_out, edge_index, edge_weight, adj = lgl_forward(
            x, weights, biases, config["temp"], config["theta"]
        )
        jax.block_until_ready((x_out, edge_index, edge_weight, adj))

        adj_ref = lgl_reference(x, weights, biases, config["temp"], config["theta"])
        np.testing.assert_allclose(np.asarray(adj), np.asarray(adj_ref), rtol=1e-3, atol=1e-3)
        assert x_out.shape == (n, INPUT_SIZE)
        assert edge_index.shape == (2, n * n)
        assert edge_weight.shape == (n * n,)
        assert adj.shape == (n, n)
        assert adj.dtype == jnp.float32

    print("KERNEL_OK")
</pallas_src>

<mosaic_0001>
module attributes {stable_mosaic.version = 11 : i64} {
  func.func @kernel(%arg0: i32, %arg1: memref<128x16xf32, #tpu.memory_space<vmem>>, %arg2: memref<16x32xf32, #tpu.memory_space<vmem>>, %arg3: memref<1x32xf32, #tpu.memory_space<vmem>>, %arg4: memref<32x16xf32, #tpu.memory_space<vmem>>, %arg5: memref<1x16xf32, #tpu.memory_space<vmem>>, %arg6: memref<128x16xf32, #tpu.memory_space<vmem>>) attributes {dimension_semantics = [#tpu.dimension_semantics<parallel>], iteration_bounds = array<i64: 1>, scalar_prefetch = 0 : i64, scratch_operands = 0 : i64, tpu.core_type = #tpu.core_type<tc>, window_params = [{transform_indices = @transform_0, window_bounds = array<i64: 128, 16>}, {pipeline_mode = #tpu.pipeline_mode<synchronous>, transform_indices = @transform_1, window_bounds = array<i64: 16, 32>}, {pipeline_mode = #tpu.pipeline_mode<synchronous>, transform_indices = @transform_2, window_bounds = array<i64: 1, 32>}, {pipeline_mode = #tpu.pipeline_mode<synchronous>, transform_indices = @transform_3, window_bounds = array<i64: 32, 16>}, {pipeline_mode = #tpu.pipeline_mode<synchronous>, transform_indices = @transform_4, window_bounds = array<i64: 1, 16>}, {transform_indices = @transform_5, window_bounds = array<i64: 128, 16>}]} {
    %c0 = arith.constant 0 : index
    %c0_0 = arith.constant 0 : index
    %0 = vector.load %arg1[%c0, %c0_0] : memref<128x16xf32, #tpu.memory_space<vmem>>, vector<128x16xf32>
    %c0_1 = arith.constant 0 : index
    %c0_2 = arith.constant 0 : index
    %1 = vector.load %arg2[%c0_1, %c0_2] : memref<16x32xf32, #tpu.memory_space<vmem>>, vector<16x32xf32>
    %c0_3 = arith.constant 0 : index
    %c0_4 = arith.constant 0 : index
    %2 = vector.load %arg3[%c0_3, %c0_4] : memref<1x32xf32, #tpu.memory_space<vmem>>, vector<1x32xf32>
    %cst = arith.constant dense<0.000000e+00> : vector<128x32xf32>
    %3 = tpu.matmul %0, %1, %cst {dimension_numbers = #tpu.dot_dimension_numbers<[1], [0], [0], [1], [0, 0, 1, 1], [], []>} : vector<128x16xf32>, vector<16x32xf32>, vector<128x32xf32> -> vector<128x32xf32>
    %4 = vector.broadcast %2 : vector<1x32xf32> to vector<128x32xf32>
    %5 = arith.addf %3, %4 : vector<128x32xf32>
    %cst_5 = arith.constant 0.000000e+00 : f32
    %6 = vector.broadcast %cst_5 : f32 to vector<128x32xf32>
    %7 = arith.maximumf %5, %6 : vector<128x32xf32>
    %c0_6 = arith.constant 0 : index
    %c0_7 = arith.constant 0 : index
    %8 = vector.load %arg4[%c0_6, %c0_7] : memref<32x16xf32, #tpu.memory_space<vmem>>, vector<32x16xf32>
    %c0_8 = arith.constant 0 : index
    %c0_9 = arith.constant 0 : index
    %9 = vector.load %arg5[%c0_8, %c0_9] : memref<1x16xf32, #tpu.memory_space<vmem>>, vector<1x16xf32>
    %cst_10 = arith.constant dense<0.000000e+00> : vector<128x16xf32>
    %10 = tpu.matmul %7, %8, %cst_10 {dimension_numbers = #tpu.dot_dimension_numbers<[1], [0], [0], [1], [0, 0, 1, 1], [], []>} : vector<128x32xf32>, vector<32x16xf32>, vector<128x16xf32> -> vector<128x16xf32>
    %11 = vector.broadcast %9 : vector<1x16xf32> to vector<128x16xf32>
    %12 = arith.addf %10, %11 : vector<128x16xf32>
    %cst_11 = arith.constant 0.000000e+00 : f32
    %13 = vector.broadcast %cst_11 : f32 to vector<128x16xf32>
    %14 = arith.maximumf %12, %13 : vector<128x16xf32>
    %c0_12 = arith.constant 0 : index
    %c0_13 = arith.constant 0 : index
    %15 = vector.load %arg6[%c0_12, %c0_13] : memref<128x16xf32, #tpu.memory_space<vmem>>, vector<128x16xf32>
    tpu.vector_store %arg6[%c0_12, %c0_13], %14 {strides = array<i32>} : memref<128x16xf32, #tpu.memory_space<vmem>>, vector<128x16xf32>,
    return
  }
  func.func @transform_0(%arg0: i32) -> (i32, i32) {
    %c0_i32 = arith.constant 0 : i32
    %c0_i32_0 = arith.constant 0 : i32
    return %arg0, %c0_i32 : i32, i32
  }
  func.func @transform_1(%arg0: i32) -> (i32, i32) {
    %c0_i32 = arith.constant 0 : i32
    %c0_i32_0 = arith.constant 0 : i32
    %c0_i32_1 = arith.constant 0 : i32
    return %c0_i32, %c0_i32_0 : i32, i32
  }
  func.func @transform_2(%arg0: i32) -> (i32, i32) {
    %c0_i32 = arith.constant 0 : i32
    %c0_i32_0 = arith.constant 0 : i32
    %c0_i32_1 = arith.constant 0 : i32
    return %c0_i32, %c0_i32_0 : i32, i32
  }
  func.func @transform_3(%arg0: i32) -> (i32, i32) {
    %c0_i32 = arith.constant 0 : i32
    %c0_i32_0 = arith.constant 0 : i32
    %c0_i32_1 = arith.constant 0 : i32
    return %c0_i32, %c0_i32_0 : i32, i32
  }
  func.func @transform_4(%arg0: i32) -> (i32, i32) {
    %c0_i32 = arith.constant 0 : i32
    %c0_i32_0 = arith.constant 0 : i32
    %c0_i32_1 = arith.constant 0 : i32
    return %c0_i32, %c0_i32_0 : i32, i32
  }
  func.func @transform_5(%arg0: i32) -> (i32, i32) {
    %c0_i32 = arith.constant 0 : i32
    %c0_i32_0 = arith.constant 0 : i32
    return %arg0, %c0_i32 : i32, i32
  }
}

</mosaic_0001>

<bundles_post_ra>
// kernel: tpu_custom_call.1
= control target key start
LH: loop header
LB: loop body
LE: loop exit
PB: predicated region body
PF: predicated region fallthrough
CT: control target
= control target key end

     0   :  { %vm45_vm0 = vcmask 130048   ;;  %vm266_vm1 = vcmask 261120   ;;  %s826_s1 = inlined_call_operand.vmem [shape: f32[16,32], index: 1, kind: input, shape index: {}]   ;;  %s827_s0 = inlined_call_operand.vmem [shape: f32[128,16], index: 0, kind: input, shape index: {}]   ;;  %s828_s3 = inlined_call_operand.vmem [shape: f32[32,16], index: 3, kind: input, shape index: {}]   ;;  %s829_s2 = inlined_call_operand.vmem [shape: f32[1,32], index: 2, kind: input, shape index: {}]   ;;  %s830_s4 = inlined_call_operand.vmem [shape: f32[1,16], index: 4, kind: input, shape index: {}]   ;;  %s831_s5 = inlined_call_operand.vmem [shape: f32[128,16], index: 5, kind: output, shape index: {}]  }
   0x1   :  { %v37_v0 = vld [vmem:[%s826_s1 + $0x8] sm:$0xff]  ;;  %v36_v1 = vld [vmem:[%s826_s1] sm:$0xff]  ;;  %v22_v4 = vld [vmem:[%s827_s0 + $0x10] sm:$0xff] }
   0x2   :  { %v20_v2 = vld [vmem:[%s827_s0] sm:$0xff]  ;;  %568 = vmatprep.subr.mxu0 %v37_v0  ;;  %v21_v3 = vld [vmem:[%s827_s0 + $0x8] sm:$0xff]  ;;  %v23_v5 = vld [vmem:[%s827_s0 + $0x18] sm:$0xff] }
   0x3   :  { %572 = vmatprep.mubr.msk.f32.mxu0 %vm45_vm0, %v20_v2  ;;  %569 = vmatpush3.msra.mxu0 %v37_v0  ;;  %v24_v6 = vld [vmem:[%s827_s0 + $0x20] sm:$0xff]  ;;  %v25_v7 = vld [vmem:[%s827_s0 + $0x28] sm:$0xff]  ;;  %v26_v8 = vld [vmem:[%s827_s0 + $0x30] sm:$0xff] }
   0x4   :  { %570 = vmatprep.subr.mxu0 %v36_v1  ;;  %v27_v9 = vld [vmem:[%s827_s0 + $0x38] sm:$0xff]  ;;  %v28_v10 = vld [vmem:[%s827_s0 + $0x40] sm:$0xff]  ;;  %v29_v11 = vld [vmem:[%s827_s0 + $0x48] sm:$0xff] }
   0x5   :  { %571 = vmatpush3.msra.mxu0 %v36_v1  ;;  %v30_v12 = vld [vmem:[%s827_s0 + $0x50] sm:$0xff]  ;;  %v31_v13 = vld [vmem:[%s827_s0 + $0x58] sm:$0xff]  ;;  %v32_v14 = vld [vmem:[%s827_s0 + $0x60] sm:$0xff] }
   0x6   :  { %573 = vmatmul.mubr.msk.f32.vlgmr.msra.gmra.mxu0 %vm45_vm0, %v21_v3  ;;  %v33_v15 = vld [vmem:[%s827_s0 + $0x68] sm:$0xff]  ;;  %v34_v16 = vld [vmem:[%s827_s0 + $0x70] sm:$0xff]  ;;  %v35_v17 = vld [vmem:[%s827_s0 + $0x78] sm:$0xff] }
   0x7   :  { %575 = vmatprep.mubr.msk.f32.mxu0 %vm45_vm0, %v22_v4  ;;  %v258_v18 = vld [vmem:[%s828_s3 + $0x18] sm:$0xff]  ;;  %v257_v19 = vld [vmem:[%s828_s3 + $0x10] sm:$0xff]  ;;  %v256_v20 = vld [vmem:[%s828_s3 + $0x8] sm:$0xff] }
   0x8   :  { %596 = vmatprep.subr.mxu1 %v258_v18  ;;  %v255_v21 = vld [vmem:[%s828_s3] sm:$0xff] }
   0x9   :  { %597 = vmatpush3.msra.mxu1 %v258_v18  ;;  %v496_v22 = vld [vmem:[%s829_s2] ss:$0 sm:$0xff] }
   0xa   :  { %576 = vmatmul.mubr.msk.f32.gmra.mxu0 %vm45_vm0, %v23_v5  ;;  %598 = vmatprep.subr.mxu1 %v257_v19 }
   0xb   :  { %578 = vmatprep.mubr.msk.f32.mxu0 %vm45_vm0, %v24_v6  ;;  %599 = vmatpush3.msra.mxu1 %v257_v19 }
   0xc   :  { %600 = vmatprep.subr.mxu1 %v256_v20 }
   0xd   :  { %601 = vmatpush3.msra.mxu1 %v256_v20 }
   0xe   :  { %579 = vmatmul.mubr.msk.f32.gmra.mxu0 %vm45_vm0, %v25_v7  ;;  %602 = vmatprep.subr.mxu1 %v255_v21  ;;  %v513_v7 = vld [vmem:[%s830_s4] ss:$0 sm:$0xff] }
   0xf   :  { %581 = vmatprep.mubr.msk.f32.mxu0 %vm45_vm0, %v26_v8  ;;  %603 = vmatpush3.msra.mxu1 %v255_v21 }
  0x12   :  { %582 = vmatmul.mubr.msk.f32.gmra.mxu0 %vm45_vm0, %v27_v9 }
  0x13   :  { %584 = vmatprep.mubr.msk.f32.mxu0 %vm45_vm0, %v28_v10 }
  0x16   :  { %585 = vmatmul.mubr.msk.f32.gmra.mxu0 %vm45_vm0, %v29_v11 }
  0x17   :  { %587 = vmatprep.mubr.msk.f32.mxu0 %vm45_vm0, %v30_v12 }
  0x1a   :  { %588 = vmatmul.mubr.msk.f32.gmra.mxu0 %vm45_vm0, %v31_v13 }
  0x1b   :  { %590 = vmatprep.mubr.msk.f32.mxu0 %vm45_vm0, %v32_v14 }
  0x1e   :  { %591 = vmatmul.mubr.msk.f32.gmra.mxu0 %vm45_vm0, %v33_v15 }
  0x1f   :  { %593 = vmatprep.mubr.msk.f32.mxu0 %vm45_vm0, %v34_v16 }
  0x22   :  { %594 = vmatmul.mubr.msk.f32.gmra.mxu0 %vm45_vm0, %v35_v17 }
  0xc6   :  { %v574_v23 = vpop.f32.mrf.mxu0 }
  0xc7   :  { %v166_v24 = vadd.f32 %v574_v23, %v496_v22 }
  0xc8   :  { %v160_v25 = vpop.f32.mrf.mxu0 }
  0xc9   :  { %v161_v26 = vadd.f32 %v496_v22, %v160_v25  ;;  %v240_v29 = vmax.f32 %v166_v24, 0.0 }
  0xca   :  { %v577_v27 = vpop.f32.mrf.mxu0 }
  0xcb   :  { %v239_v28 = vmax.f32 %v161_v26, 0.0  ;;  %v176_v30 = vadd.f32 %v577_v27, %v496_v22 }
  0xcc   :  { %v170_v31 = vpop.f32.mrf.mxu0 }
  0xcd   :  { %v171_v32 = vadd.f32 %v496_v22, %v170_v31  ;;  %604 = vmatprep.mubr.msk.f32.mxu1 %vm266_vm1, %v239_v28  ;;  %v242_v35 = vmax.f32 %v176_v30, 0.0 }
  0xce   :  { %v580_v33 = vpop.f32.mrf.mxu0  ;;  %605 = vmatmul.mubr.msk.f32.vlgmr.msra.gmra.mxu1 %vm266_vm1, %v240_v29 }
  0xcf   :  { %v241_v34 = vmax.f32 %v171_v32, 0.0  ;;  %v186_v36 = vadd.f32 %v580_v33, %v496_v22 }
  0xd0   :  { %v180_v37 = vpop.f32.mrf.mxu0 }
  0xd1   :  { %v181_v38 = vadd.f32 %v496_v22, %v180_v37  ;;  %607 = vmatprep.mubr.msk.f32.mxu1 %vm266_vm1, %v241_v34  ;;  %v244_v41 = vmax.f32 %v186_v36, 0.0 }
  0xd2   :  { %v583_v39 = vpop.f32.mrf.mxu0  ;;  %608 = vmatmul.mubr.msk.f32.gmra.mxu1 %vm266_vm1, %v242_v35 }
  0xd3   :  { %v243_v40 = vmax.f32 %v181_v38, 0.0  ;;  %v196_v42 = vadd.f32 %v583_v39, %v496_v22 }
  0xd4   :  { %v190_v43 = vpop.f32.mrf.mxu0 }
  0xd5   :  { %v191_v44 = vadd.f32 %v496_v22, %v190_v43  ;;  %610 = vmatprep.mubr.msk.f32.mxu1 %vm266_vm1, %v243_v40  ;;  %v246_v47 = vmax.f32 %v196_v42, 0.0 }
  0xd6   :  { %v586_v45 = vpop.f32.mrf.mxu0  ;;  %611 = vmatmul.mubr.msk.f32.gmra.mxu1 %vm266_vm1, %v244_v41 }
  0xd7   :  { %v245_v46 = vmax.f32 %v191_v44, 0.0  ;;  %v206_v48 = vadd.f32 %v586_v45, %v496_v22 }
  0xd8   :  { %v200_v49 = vpop.f32.mrf.mxu0 }
  0xd9   :  { %v201_v50 = vadd.f32 %v496_v22, %v200_v49  ;;  %613 = vmatprep.mubr.msk.f32.mxu1 %vm266_vm1, %v245_v46  ;;  %v248_v53 = vmax.f32 %v206_v48, 0.0 }
  0xda   :  { %v589_v51 = vpop.f32.mrf.mxu0  ;;  %614 = vmatmul.mubr.msk.f32.gmra.mxu1 %vm266_vm1, %v246_v47 }
  0xdb   :  { %v247_v52 = vmax.f32 %v201_v50, 0.0  ;;  %v216_v54 = vadd.f32 %v589_v51, %v496_v22 }
  0xdc   :  { %v210_v55 = vpop.f32.mrf.mxu0 }
  0xdd   :  { %v211_v56 = vadd.f32 %v496_v22, %v210_v55  ;;  %616 = vmatprep.mubr.msk.f32.mxu1 %vm266_vm1, %v247_v52  ;;  %v250_v59 = vmax.f32 %v216_v54, 0.0 }
  0xde   :  { %v592_v57 = vpop.f32.mrf.mxu0  ;;  %617 = vmatmul.mubr.msk.f32.gmra.mxu1 %vm266_vm1, %v248_v53 }
  0xdf   :  { %v249_v58 = vmax.f32 %v211_v56, 0.0  ;;  %v226_v60 = vadd.f32 %v592_v57, %v496_v22 }
  0xe0   :  { %v220_v61 = vpop.f32.mrf.mxu0 }
  0xe1   :  { %v221_v62 = vadd.f32 %v496_v22, %v220_v61  ;;  %619 = vmatprep.mubr.msk.f32.mxu1 %vm266_vm1, %v249_v58  ;;  %v252_v1 = vmax.f32 %v226_v60, 0.0 }
  0xe2   :  { %v595_v63 = vpop.f32.mrf.mxu0  ;;  %620 = vmatmul.mubr.msk.f32.gmra.mxu1 %vm266_vm1, %v250_v59 }
  0xe3   :  { %v251_v0 = vmax.f32 %v221_v62, 0.0  ;;  %v236_v2 = vadd.f32 %v595_v63, %v496_v22 }
  0xe4   :  { %v230_v3 = vpop.f32.mrf.mxu0 }
  0xe5   :  { %v231_v4 = vadd.f32 %v496_v22, %v230_v3  ;;  %622 = vmatprep.mubr.msk.f32.mxu1 %vm266_vm1, %v251_v0  ;;  %v254_v6 = vmax.f32 %v236_v2, 0.0 }
  0xe6   :  { %623 = vmatmul.mubr.msk.f32.gmra.mxu1 %vm266_vm1, %v252_v1 }
  0xe7   :  { %v253_v5 = vmax.f32 %v231_v4, 0.0 }
  0xe9   :  { %625 = vmatprep.mubr.msk.f32.mxu1 %vm266_vm1, %v253_v5 }
  0xea   :  { %626 = vmatmul.mubr.msk.f32.gmra.mxu1 %vm266_vm1, %v254_v6 }
 0x18e   :  { %v606_v8 = vpop.f32.mrf.mxu1 }
 0x18f   :  { %v387_v9 = vadd.f32 %v606_v8, %v513_v7 }
 0x190   :  { %v381_v10 = vpop.f32.mrf.mxu1 }
 0x191   :  { %v461_v11 = vmax.f32 %v387_v9, 0.0  ;;  %v382_v12 = vadd.f32 %v513_v7, %v381_v10 }
 0x192   :  { %v609_v13 = vpop.f32.mrf.mxu1 }
 0x193   :  { %477 = vst.msk [vmem:[%s831_s5 + $0x8] sm:$0xff] %vm45_vm0, %v461_v11  ;;  %v460_v14 = vmax.f32 %v382_v12, 0.0  ;;  %v397_v15 = vadd.f32 %v609_v13, %v513_v7 }
 0x194   :  { %v391_v16 = vpop.f32.mrf.mxu1 }
 0x195   :  { %476 = vst.msk [vmem:[%s831_s5] sm:$0xff] %vm45_vm0, %v460_v14  ;;  %v463_v17 = vmax.f32 %v397_v15, 0.0  ;;  %v392_v18 = vadd.f32 %v513_v7, %v391_v16 }
 0x196   :  { %v612_v19 = vpop.f32.mrf.mxu1 }
 0x197   :  { %479 = vst.msk [vmem:[%s831_s5 + $0x18] sm:$0xff] %vm45_vm0, %v463_v17  ;;  %v462_v20 = vmax.f32 %v392_v18, 0.0  ;;  %v407_v21 = vadd.f32 %v612_v19, %v513_v7 }
 0x198   :  { %v401_v22 = vpop.f32.mrf.mxu1 }
 0x199   :  { %478 = vst.msk [vmem:[%s831_s5 + $0x10] sm:$0xff] %vm45_vm0, %v462_v20  ;;  %v465_v23 = vmax.f32 %v407_v21, 0.0  ;;  %v402_v24 = vadd.f32 %v513_v7, %v401_v22 }
 0x19a   :  { %v615_v25 = vpop.f32.mrf.mxu1 }
 0x19b   :  { %481 = vst.msk [vmem:[%s831_s5 + $0x28] sm:$0xff] %vm45_vm0, %v465_v23  ;;  %v464_v26 = vmax.f32 %v402_v24, 0.0  ;;  %v417_v27 = vadd.f32 %v615_v25, %v513_v7 }
 0x19c   :  { %v411_v28 = vpop.f32.mrf.mxu1 }
 0x19d   :  { %480 = vst.msk [vmem:[%s831_s5 + $0x20] sm:$0xff] %vm45_vm0, %v464_v26  ;;  %v467_v29 = vmax.f32 %v417_v27, 0.0  ;;  %v412_v30 = vadd.f32 %v513_v7, %v411_v28 }
 0x19e   :  { %v618_v31 = vpop.f32.mrf.mxu1 }
 0x19f   :  { %483 = vst.msk [vmem:[%s831_s5 + $0x38] sm:$0xff] %vm45_vm0, %v467_v29  ;;  %v466_v32 = vmax.f32 %v412_v30, 0.0  ;;  %v427_v33 = vadd.f32 %v618_v31, %v513_v7 }
 0x1a0   :  { %v421_v34 = vpop.f32.mrf.mxu1 }
 0x1a1   :  { %482 = vst.msk [vmem:[%s831_s5 + $0x30] sm:$0xff] %vm45_vm0, %v466_v32  ;;  %v469_v35 = vmax.f32 %v427_v33, 0.0  ;;  %v422_v36 = vadd.f32 %v513_v7, %v421_v34 }
 0x1a2   :  { %v621_v37 = vpop.f32.mrf.mxu1 }
 0x1a3   :  { %485 = vst.msk [vmem:[%s831_s5 + $0x48] sm:$0xff] %vm45_vm0, %v469_v35  ;;  %v468_v38 = vmax.f32 %v422_v36, 0.0  ;;  %v437_v39 = vadd.f32 %v621_v37, %v513_v7 }
 0x1a4   :  { %v431_v40 = vpop.f32.mrf.mxu1 }
 0x1a5   :  { %484 = vst.msk [vmem:[%s831_s5 + $0x40] sm:$0xff] %vm45_vm0, %v468_v38  ;;  %v471_v41 = vmax.f32 %v437_v39, 0.0  ;;  %v432_v42 = vadd.f32 %v513_v7, %v431_v40 }
 0x1a6   :  { %v624_v43 = vpop.f32.mrf.mxu1 }
 0x1a7   :  { %487 = vst.msk [vmem:[%s831_s5 + $0x58] sm:$0xff] %vm45_vm0, %v471_v41  ;;  %v470_v44 = vmax.f32 %v432_v42, 0.0  ;;  %v447_v45 = vadd.f32 %v624_v43, %v513_v7 }
 0x1a8   :  { %v441_v46 = vpop.f32.mrf.mxu1 }
 0x1a9   :  { %486 = vst.msk [vmem:[%s831_s5 + $0x50] sm:$0xff] %vm45_vm0, %v470_v44  ;;  %v473_v47 = vmax.f32 %v447_v45, 0.0  ;;  %v442_v48 = vadd.f32 %v513_v7, %v441_v46 }
 0x1aa   :  { %v627_v49 = vpop.f32.mrf.mxu1 }
 0x1ab   :  { %489 = vst.msk [vmem:[%s831_s5 + $0x68] sm:$0xff] %vm45_vm0, %v473_v47  ;;  %v472_v50 = vmax.f32 %v442_v48, 0.0  ;;  %v457_v51 = vadd.f32 %v627_v49, %v513_v7 }
 0x1ac   :  { %v451_v52 = vpop.f32.mrf.mxu1 }
 0x1ad   :  { %488 = vst.msk [vmem:[%s831_s5 + $0x60] sm:$0xff] %vm45_vm0, %v472_v50  ;;  %v475_v53 = vmax.f32 %v457_v51, 0.0  ;;  %v452_v54 = vadd.f32 %v513_v7, %v451_v52 }
 0x1af   :  { %491 = vst.msk [vmem:[%s831_s5 + $0x78] sm:$0xff] %vm45_vm0, %v475_v53  ;;  %v474_v55 = vmax.f32 %v452_v54, 0.0 }
 0x1b1   :  { %490 = vst.msk [vmem:[%s831_s5 + $0x70] sm:$0xff] %vm45_vm0, %v474_v55 }

</bundles_post_ra>
